<compile_context>
chip_gen: v5e
topology: v5e:2x2
jax: 0.10.0
libtpu: 0.0.40
codegen_flags: <defaults>
</compile_context>

<pallas_src>
import jax
import jax.numpy as jnp
from jax.experimental import pallas as pl
from jax.experimental.pallas import tpu as pltpu


def _round_up(x, m):
    return ((x + m - 1) // m) * m


# ----------------------------- Fused Pallas kernel --------------------------

def _make_fused_decoder_kernel(has_proj):
    """Build the fused kernel body for all decoders.

    Positional ref layout:
      x_ref,
      per decoder k: [pwT_ref, pb_ref,]  dwT_ref, db_ref      (pwT/dwT stored as [K, N])
      out_ref_0 .. out_ref_{n-1},
      h_scratch refs (one per decoder that has a projection).
    """
    n_dec = len(has_proj)

    def kernel(*refs):
        idx = 0
        x_ref = refs[idx]; idx += 1
        w_refs = []
        for hp in has_proj:
            n = 4 if hp else 2
            w_refs.append(refs[idx:idx + n]); idx += n
        out_refs = refs[idx:idx + n_dec]; idx += n_dec
        scratch_refs = refs[idx:]

        x = x_ref[...]                       # [tm, D_pad], loaded once for all decoders
        si = 0
        for hp, wr, o_ref in zip(has_proj, w_refs, out_refs):
            if hp:
                pwT_ref, pb_ref, dwT_ref, db_ref = wr
                h_ref = scratch_refs[si]; si += 1
                # proj Linear: h = x @ W_proj^T + b_proj   (weight already [K, N])
                h_ref[...] = (
                    jnp.dot(x, pwT_ref[...], preferred_element_type=jnp.float32)
                    + pb_ref[...]
                ).astype(h_ref.dtype)
                h = h_ref[...]
            else:
                dwT_ref, db_ref = wr
                h = x
            # tied decoder Linear: y = h @ W_dec^T + b_dec
            o_ref[...] = (
                jnp.dot(h, dwT_ref[...], preferred_element_type=jnp.float32)
                + db_ref[...]
            ).astype(o_ref.dtype)

    return kernel


# --------------------------- Module equivalent ------------------------------

class TransformerDecPallas:
    """Pallas equivalent of TransformerDec.

    params: list (one per decoder) of dicts:
        'dec_w'  [vocab_k, n_hid_k]   (tied embedding weight)
        'dec_b'  [vocab_k]
        optional 'proj_w' [n_hid_k, d_model], 'proj_b' [n_hid_k]
        (present only when d_model != n_hid_k, mirroring the nn.Sequential path)

    compute_dtype: None (keep input dtype, f32 in the demo) or e.g. jnp.bfloat16
        for v6e/v7x production shapes (accumulation stays f32).
    """

    def __init__(self, params, d_model, compute_dtype=None, tm_max=256):
        self.d_model = d_model
        self.compute_dtype = compute_dtype
        self.tm_max = tm_max

        wdt = compute_dtype if compute_dtype is not None else jnp.float32
        d_pad = _round_up(d_model, 128)
        self.d_pad = d_pad

        self.vocab_sizes = []
        self.v_pads = []
        self.h_pads = []
        self.has_proj = []
        self.flat_weights = []   # pre-transposed + zero-padded, built ONCE

        for p in params:
            dec_w = p["dec_w"]                    # [vocab, n_hid]
            dec_b = p["dec_b"]                    # [vocab]
            vocab, n_hid = dec_w.shape
            v_pad = _round_up(vocab, 128)
            h_pad = _round_up(n_hid, 128)
            hp = "proj_w" in p

            self.vocab_sizes.append(vocab)
            self.v_pads.append(v_pad)
            self.h_pads.append(h_pad)
            self.has_proj.append(hp)

            if hp:
                pw = p["proj_w"]                  # [n_hid, d_model]
                pb = p["proj_b"]                  # [n_hid]
                pwT = jnp.zeros((d_pad, h_pad), wdt).at[:d_model, :n_hid].set(
                    pw.T.astype(wdt))
                pbp = jnp.zeros((1, h_pad), jnp.float32).at[0, :n_hid].set(
                    pb.astype(jnp.float32))
                self.flat_weights += [pwT, pbp]
                k_pad = h_pad                     # 2nd GEMM contracts over n_hid
            else:
                k_pad = d_pad                     # n_hid == d_model on this path

            dwT = jnp.zeros((k_pad, v_pad), wdt).at[:n_hid, :vocab].set(
                dec_w.T.astype(wdt))
            dbp = jnp.zeros((1, v_pad), jnp.float32).at[0, :vocab].set(
                dec_b.astype(jnp.float32))
            self.flat_weights += [dwT, dbp]

        self._kernel = _make_fused_decoder_kernel(tuple(self.has_proj))

    def __call__(self, inp):
        raw_outputs, outputs = inp
        output = outputs[-1]                      # RNNDropout(p=0.0) -> identity
        B, S, D = output.shape
        assert D == self.d_model
        M = B * S
        x2d = output.reshape(M, D)

        # M tiling: tm multiple of 8, grid axis marked "parallel" (megacore / v7x).
        tm = min(self.tm_max, _round_up(M, 8))
        m_pad = _round_up(M, tm)
        grid = (m_pad // tm,)

        x_dt = self.compute_dtype if self.compute_dtype is not None else x2d.dtype
        x_pad = jnp.zeros((m_pad, self.d_pad), x_dt).at[:M, :D].set(x2d.astype(x_dt))

        in_specs = [pl.BlockSpec((tm, self.d_pad), lambda i: (i, 0))]
        for w in self.flat_weights:
            r, c = w.shape
            # full-extent weight blocks, revisited (block index (0,0)) -> DMA'd once
            in_specs.append(pl.BlockSpec((r, c), lambda i: (0, 0)))

        out_shapes = []
        out_specs = []
        for v_pad_k in self.v_pads:
            out_shapes.append(jax.ShapeDtypeStruct((m_pad, v_pad_k), output.dtype))
            out_specs.append(pl.BlockSpec((tm, v_pad_k), lambda i: (i, 0)))

        scratch_dtype = x_dt if self.compute_dtype is not None else jnp.float32
        scratch_shapes = [
            pltpu.VMEM((tm, h_pad_k), scratch_dtype)
            for hp, h_pad_k in zip(self.has_proj, self.h_pads) if hp
        ]

        outs = pl.pallas_call(
            self._kernel,
            out_shape=tuple(out_shapes),
            grid_spec=pltpu.PrefetchScalarGridSpec(
                num_scalar_prefetch=0,
                grid=grid,
                in_specs=in_specs,
                out_specs=tuple(out_specs),
                scratch_shapes=scratch_shapes,
            ),
            compiler_params=pltpu.CompilerParams(
                dimension_semantics=("parallel",),
            ),
        )(x_pad, *self.flat_weights)

        res = []
        for y_pad, vocab in zip(outs, self.vocab_sizes):
            res.append(y_pad[:M, :vocab].reshape(B, S, vocab))
        return (res, raw_outputs, outputs)


# ------------------------------- Main ---------------------------------------

if __name__ == "__main__":
    key = jax.random.PRNGKey(0)

    # Small shapes consistent with the module's forward.
    B, S, d_model = 2, 8, 32
    # Two tied-embedding decoders: (n_hid, vocab). The second exercises the
    # Sequential(Linear(d_model, n_hid), tied_decoder) path.
    decoder_cfgs = [(32, 64), (16, 48)]

    # Deterministic parameter init (tied decoder weight == embedding weight,
    # bias zeroed, per TXLLinearDecoder.__init__ semantics).
    params = []
    for (n_hid, vocab) in decoder_cfgs:
        key, k_emb, k_pw, k_pb = jax.random.split(key, 4)
        p = {
            "dec_w": jax.random.uniform(k_emb, (vocab, n_hid),
                                        minval=-0.1, maxval=0.1,
                                        dtype=jnp.float32),
            "dec_b": jnp.zeros((vocab,), jnp.float32),
        }
        if n_hid != d_model:
            bound = 1.0 / jnp.sqrt(d_model)
            p["proj_w"] = jax.random.uniform(k_pw, (n_hid, d_model),
                                             minval=-bound, maxval=bound,
                                             dtype=jnp.float32)
            p["proj_b"] = jax.random.uniform(k_pb, (n_hid,),
                                             minval=-bound, maxval=bound,
                                             dtype=jnp.float32)
        params.append(p)

    # Build the (raw_outputs, outputs) input tuple (two "layers" each).
    key, k1, k2, k3, k4 = jax.random.split(key, 5)
    raw_outputs = [jax.random.normal(k1, (B, S, d_model), jnp.float32),
                   jax.random.normal(k2, (B, S, d_model), jnp.float32)]
    outputs = [jax.random.normal(k3, (B, S, d_model), jnp.float32),
               jax.random.normal(k4, (B, S, d_model), jnp.float32)]

    model = TransformerDecPallas(params, d_model=d_model, compute_dtype=None)
    res, raw_out, outs = model((raw_outputs, outputs))
    res = [jax.block_until_ready(r) for r in res]

    # Reference check in plain JAX (same math).
    x2d = outputs[-1].reshape(B * S, d_model)
    for r, p, (n_hid, vocab) in zip(res, params, decoder_cfgs):
        h = x2d
        if "proj_w" in p:
            h = h @ p["proj_w"].T + p["proj_b"]
        ref = (h @ p["dec_w"].T + p["dec_b"]).reshape(B, S, vocab)
        assert r.shape == (B, S, vocab), r.shape
        assert jnp.allclose(r, ref, atol=1e-5, rtol=1e-5)

    print("KERNEL_OK")
</pallas_src>

<mosaic_0001>
module attributes {stable_mosaic.version = 11 : i64} {
  func.func @kernel(%arg0: i32, %arg1: memref<16x128xf32, #tpu.memory_space<vmem>>, %arg2: memref<128x128xf32, #tpu.memory_space<vmem>>, %arg3: memref<1x128xf32, #tpu.memory_space<vmem>>, %arg4: memref<128x128xf32, #tpu.memory_space<vmem>>, %arg5: memref<1x128xf32, #tpu.memory_space<vmem>>, %arg6: memref<128x128xf32, #tpu.memory_space<vmem>>, %arg7: memref<1x128xf32, #tpu.memory_space<vmem>>, %arg8: memref<16x128xf32, #tpu.memory_space<vmem>>, %arg9: memref<16x128xf32, #tpu.memory_space<vmem>>, %arg10: memref<16x128xf32, #tpu.memory_space<vmem>>) attributes {dimension_semantics = [#tpu.dimension_semantics<parallel>], iteration_bounds = array<i64: 1>, scalar_prefetch = 0 : i64, scratch_operands = 1 : i64, tpu.core_type = #tpu.core_type<tc>, window_params = [{transform_indices = @transform_0, window_bounds = array<i64: 16, 128>}, {pipeline_mode = #tpu.pipeline_mode<synchronous>, transform_indices = @transform_1, window_bounds = array<i64: 128, 128>}, {pipeline_mode = #tpu.pipeline_mode<synchronous>, transform_indices = @transform_2, window_bounds = array<i64: 1, 128>}, {pipeline_mode = #tpu.pipeline_mode<synchronous>, transform_indices = @transform_3, window_bounds = array<i64: 128, 128>}, {pipeline_mode = #tpu.pipeline_mode<synchronous>, transform_indices = @transform_4, window_bounds = array<i64: 1, 128>}, {pipeline_mode = #tpu.pipeline_mode<synchronous>, transform_indices = @transform_5, window_bounds = array<i64: 128, 128>}, {pipeline_mode = #tpu.pipeline_mode<synchronous>, transform_indices = @transform_6, window_bounds = array<i64: 1, 128>}, {transform_indices = @transform_7, window_bounds = array<i64: 16, 128>}, {transform_indices = @transform_8, window_bounds = array<i64: 16, 128>}]} {
    %c0 = arith.constant 0 : index
    %c0_0 = arith.constant 0 : index
    %0 = vector.load %arg1[%c0, %c0_0] : memref<16x128xf32, #tpu.memory_space<vmem>>, vector<16x128xf32>
    %c0_1 = arith.constant 0 : index
    %c0_2 = arith.constant 0 : index
    %1 = vector.load %arg2[%c0_1, %c0_2] : memref<128x128xf32, #tpu.memory_space<vmem>>, vector<128x128xf32>
    %cst = arith.constant dense<0.000000e+00> : vector<16x128xf32>
    %2 = tpu.matmul %0, %1, %cst {dimension_numbers = #tpu.dot_dimension_numbers<[1], [0], [0], [1], [0, 0, 1, 1], [], []>} : vector<16x128xf32>, vector<128x128xf32>, vector<16x128xf32> -> vector<16x128xf32>
    %c0_3 = arith.constant 0 : index
    %c0_4 = arith.constant 0 : index
    %3 = vector.load %arg3[%c0_3, %c0_4] : memref<1x128xf32, #tpu.memory_space<vmem>>, vector<1x128xf32>
    %4 = vector.broadcast %3 : vector<1x128xf32> to vector<16x128xf32>
    %5 = arith.addf %2, %4 : vector<16x128xf32>
    %c0_5 = arith.constant 0 : index
    %c0_6 = arith.constant 0 : index
    %6 = vector.load %arg8[%c0_5, %c0_6] : memref<16x128xf32, #tpu.memory_space<vmem>>, vector<16x128xf32>
    tpu.vector_store %arg8[%c0_5, %c0_6], %5 {strides = array<i32>} : memref<16x128xf32, #tpu.memory_space<vmem>>, vector<16x128xf32>,
    %c0_7 = arith.constant 0 : index
    %c0_8 = arith.constant 0 : index
    %7 = vector.load %arg4[%c0_7, %c0_8] : memref<128x128xf32, #tpu.memory_space<vmem>>, vector<128x128xf32>
    %cst_9 = arith.constant dense<0.000000e+00> : vector<16x128xf32>
    %8 = tpu.matmul %0, %7, %cst_9 {dimension_numbers = #tpu.dot_dimension_numbers<[1], [0], [0], [1], [0, 0, 1, 1], [], []>} : vector<16x128xf32>, vector<128x128xf32>, vector<16x128xf32> -> vector<16x128xf32>
    %c0_10 = arith.constant 0 : index
    %c0_11 = arith.constant 0 : index
    %9 = vector.load %arg5[%c0_10, %c0_11] : memref<1x128xf32, #tpu.memory_space<vmem>>, vector<1x128xf32>
    %10 = vector.broadcast %9 : vector<1x128xf32> to vector<16x128xf32>
    %11 = arith.addf %8, %10 : vector<16x128xf32>
    %c0_12 = arith.constant 0 : index
    %c0_13 = arith.constant 0 : index
    %12 = vector.load %arg10[%c0_12, %c0_13] : memref<16x128xf32, #tpu.memory_space<vmem>>, vector<16x128xf32>
    tpu.vector_store %arg10[%c0_12, %c0_13], %11 {strides = array<i32>} : memref<16x128xf32, #tpu.memory_space<vmem>>, vector<16x128xf32>,
    %c0_14 = arith.constant 0 : index
    %c0_15 = arith.constant 0 : index
    %13 = vector.load %arg10[%c0_14, %c0_15] : memref<16x128xf32, #tpu.memory_space<vmem>>, vector<16x128xf32>
    %c0_16 = arith.constant 0 : index
    %c0_17 = arith.constant 0 : index
    %14 = vector.load %arg6[%c0_16, %c0_17] : memref<128x128xf32, #tpu.memory_space<vmem>>, vector<128x128xf32>
    %cst_18 = arith.constant dense<0.000000e+00> : vector<16x128xf32>
    %15 = tpu.matmul %13, %14, %cst_18 {dimension_numbers = #tpu.dot_dimension_numbers<[1], [0], [0], [1], [0, 0, 1, 1], [], []>} : vector<16x128xf32>, vector<128x128xf32>, vector<16x128xf32> -> vector<16x128xf32>
    %c0_19 = arith.constant 0 : index
    %c0_20 = arith.constant 0 : index
    %16 = vector.load %arg7[%c0_19, %c0_20] : memref<1x128xf32, #tpu.memory_space<vmem>>, vector<1x128xf32>
    %17 = vector.broadcast %16 : vector<1x128xf32> to vector<16x128xf32>
    %18 = arith.addf %15, %17 : vector<16x128xf32>
    %c0_21 = arith.constant 0 : index
    %c0_22 = arith.constant 0 : index
    %19 = vector.load %arg9[%c0_21, %c0_22] : memref<16x128xf32, #tpu.memory_space<vmem>>, vector<16x128xf32>
    tpu.vector_store %arg9[%c0_21, %c0_22], %18 {strides = array<i32>} : memref<16x128xf32, #tpu.memory_space<vmem>>, vector<16x128xf32>,
    return
  }
  func.func @transform_0(%arg0: i32) -> (i32, i32) {
    %c0_i32 = arith.constant 0 : i32
    %c0_i32_0 = arith.constant 0 : i32
    return %arg0, %c0_i32 : i32, i32
  }
  func.func @transform_1(%arg0: i32) -> (i32, i32) {
    %c0_i32 = arith.constant 0 : i32
    %c0_i32_0 = arith.constant 0 : i32
    %c0_i32_1 = arith.constant 0 : i32
    return %c0_i32, %c0_i32_0 : i32, i32
  }
  func.func @transform_2(%arg0: i32) -> (i32, i32) {
    %c0_i32 = arith.constant 0 : i32
    %c0_i32_0 = arith.constant 0 : i32
    %c0_i32_1 = arith.constant 0 : i32
    return %c0_i32, %c0_i32_0 : i32, i32
  }
  func.func @transform_3(%arg0: i32) -> (i32, i32) {
    %c0_i32 = arith.constant 0 : i32
    %c0_i32_0 = arith.constant 0 : i32
    %c0_i32_1 = arith.constant 0 : i32
    return %c0_i32, %c0_i32_0 : i32, i32
  }
  func.func @transform_4(%arg0: i32) -> (i32, i32) {
    %c0_i32 = arith.constant 0 : i32
    %c0_i32_0 = arith.constant 0 : i32
    %c0_i32_1 = arith.constant 0 : i32
    return %c0_i32, %c0_i32_0 : i32, i32
  }
  func.func @transform_5(%arg0: i32) -> (i32, i32) {
    %c0_i32 = arith.constant 0 : i32
    %c0_i32_0 = arith.constant 0 : i32
    %c0_i32_1 = arith.constant 0 : i32
    return %c0_i32, %c0_i32_0 : i32, i32
  }
  func.func @transform_6(%arg0: i32) -> (i32, i32) {
    %c0_i32 = arith.constant 0 : i32
    %c0_i32_0 = arith.constant 0 : i32
    %c0_i32_1 = arith.constant 0 : i32
    return %c0_i32, %c0_i32_0 : i32, i32
  }
  func.func @transform_7(%arg0: i32) -> (i32, i32) {
    %c0_i32 = arith.constant 0 : i32
    %c0_i32_0 = arith.constant 0 : i32
    return %arg0, %c0_i32 : i32, i32
  }
  func.func @transform_8(%arg0: i32) -> (i32, i32) {
    %c0_i32 = arith.constant 0 : i32
    %c0_i32_0 = arith.constant 0 : i32
    return %arg0, %c0_i32 : i32, i32
  }
}

</mosaic_0001>

<bundles_post_ra>
// kernel: tpu_custom_call.1
= control target key start
LH: loop header
LB: loop body
LE: loop exit
PB: predicated region body
PF: predicated region fallthrough
CT: control target
= control target key end

     0   :  { %14 = vsyncpa [#allocation4], 0  ;;  %s550_s0 = inlined_call_operand.hbm [shape: f32[16,128], index: 0, kind: input, shape index: {}]   ;;  %s551_s1 = inlined_call_operand.hbm [shape: f32[128,128], index: 1, kind: input, shape index: {}]   ;;  %s552_s2 = inlined_call_operand.vmem [shape: f32[1,128], index: 2, kind: input, shape index: {}]   ;;  %s553_s3 = inlined_call_operand.hbm [shape: f32[128,128], index: 3, kind: input, shape index: {}]   ;;  %s554_s4 = inlined_call_operand.vmem [shape: f32[1,128], index: 4, kind: input, shape index: {}]   ;;  %s555_s5 = inlined_call_operand.hbm [shape: f32[128,128], index: 5, kind: input, shape index: {}]   ;;  %s556_s6 = inlined_call_operand.vmem [shape: f32[1,128], index: 6, kind: input, shape index: {}]   ;;  %s557_s7 = inlined_call_operand.hbm [shape: f32[16,128], index: 7, kind: output, shape index: {0}]   ;;  %s558_s8 = inlined_call_operand.hbm [shape: f32[16,128], index: 8, kind: output, shape index: {1}]  }
   0x1   :  { %15 = vsyncpa [#allocation7], 0 }
   0x2   :  { %16 = vsyncpa [#allocation10], 0 }
   0x3   :  { %17 = vsyncpa [#allocation5], 0 }
   0x4   :  { %18 = vsyncpa [#allocation13], 0  ;;  %s36_s29 = sshll.u32 %s551_s1, 4  ;;  %s452_s30 = smov [#allocation6]   ;;  %s37_s29 = int_to_ptr.hbm [resolvable:$true] %s36_s29 }
   0x5   :  { %s38_s9 = sshll.u32 %s452_s30, 4  ;;  %s23_s12 = sshll.u32 %s550_s0, 4  ;;  %s39_s9 = int_to_ptr.vmem [resolvable:$true] %s38_s9  ;;  %s24_s12 = int_to_ptr.hbm [resolvable:$true] %s23_s12 }
   0x6   :  { %s453_s13 = smov 128   ;;  %s454_s14 = smov 8  }
   0x7   :  { %44 = dma.hbm_to_vmem [thread:$0]  %s37_s29, 2048, %s39_s9, [#allocation7], %s453_s13, %s453_s13, %s454_s14  }
   0x8   :  { %s455_s15 = smov [#allocation3]   ;;  %s51_s1 = sshll.u32 %s553_s3, 4  ;;  %s52_s1 = int_to_ptr.hbm [resolvable:$true] %s51_s1 }
   0x9   :  { %s25_s16 = sshll.u32 %s455_s15, 4  ;;  %s66_s20 = sshll.u32 %s555_s5, 4  ;;  %s26_s16 = int_to_ptr.vmem [resolvable:$true] %s25_s16  ;;  %s67_s20 = int_to_ptr.hbm [resolvable:$true] %s66_s20 }
   0xa   :  { %31 = dma.hbm_to_vmem [thread:$0]  %s24_s12, 256, %s26_s16, [#allocation4], %s453_s13, %s453_s13, %s454_s14  }
   0xb   :  { %s456_s21 = smov [#allocation8]   ;;  %s457_s23 = smov [#allocation9]  }
   0xc   :  { %s53_s22 = sshll.u32 %s456_s21, 4  ;;  %s68_s3 = sshll.u32 %s457_s23, 4  ;;  %s54_s22 = int_to_ptr.vmem [resolvable:$true] %s53_s22  ;;  %s69_s3 = int_to_ptr.vmem [resolvable:$true] %s68_s3 }
   0xd   :  { %59 = dma.hbm_to_vmem [thread:$0]  %s52_s1, 2048, %s54_s22, [#allocation7], %s453_s13, %s453_s13, %s454_s14  }
   0xe   :  { %74 = dma.hbm_to_vmem [thread:$0]  %s67_s20, 2048, %s69_s3, [#allocation10], %s453_s13, %s453_s13, %s454_s14  }
   0xf   :  { %442 = dma.done.wait [#allocation4], 256  }
  0x10   :  { %443 = vsyncadd [#allocation4], 4294967040 }
  0x11   :  { %444 = dma.done.wait [#allocation7], 4096  }
  0x12   :  { %445 = vsyncadd [#allocation7], 4294963200 }
  0x13   :  { %446 = dma.done.wait [#allocation10], 2048  }
  0x14   :  { %447 = vsyncadd [#allocation10], 4294965248  ;;  %v155_v0 = vld [vmem:[#allocation8 + $0x78] sm:$0xff]  ;;  %v154_v1 = vld [vmem:[#allocation8 + $0x70] sm:$0xff]  ;;  %s458_s27 = smov [#allocation11]   ;;  %s238_s9 = sshll.u32 %s557_s7, 4  ;;  %s239_s9 = int_to_ptr.hbm [resolvable:$true] %s238_s9 }
  0x15   :  { %160 = vmatpush.msra.mxu1 %v155_v0  ;;  %v153_v2 = vld [vmem:[#allocation8 + $0x68] sm:$0xff]  ;;  %v152_v3 = vld [vmem:[#allocation8 + $0x60] sm:$0xff]  ;;  %v151_v4 = vld [vmem:[#allocation8 + $0x58] sm:$0xff]  ;;  %s236_s28 = sshll.u32 %s458_s27, 4  ;;  %s459_s10 = smov [#allocation12]   ;;  %s237_s28 = int_to_ptr.vmem [resolvable:$true] %s236_s28 }
  0x16   :  { %v150_v5 = vld [vmem:[#allocation8 + $0x50] sm:$0xff]  ;;  %v202_v6 = vld [vmem:[#allocation9 + $0x78] sm:$0xff]  ;;  %v149_v9 = vld [vmem:[#allocation8 + $0x48] sm:$0xff]  ;;  %s249_s11 = sshll.u32 %s459_s10, 4  ;;  %s251_s15 = sshll.u32 %s558_s8, 4  ;;  %s250_s11 = int_to_ptr.vmem [resolvable:$true] %s249_s11  ;;  %s252_s15 = int_to_ptr.hbm [resolvable:$true] %s251_s15 }
  0x17   :  { %161 = vmatpush.msra.mxu1 %v154_v1  ;;  %v201_v7 = vld [vmem:[#allocation9 + $0x70] sm:$0xff]  ;;  %207 = vmatpush.msra.mxu2 %v202_v6  ;;  %v110_v8 = vld [vmem:[#allocation6 + $0x78] sm:$0xff]  ;;  %v200_v10 = vld [vmem:[#allocation9 + $0x68] sm:$0xff] }
  0x18   :  { %271 = vmatpush.msra.mxu3 %v110_v8  ;;  %v109_v11 = vld [vmem:[#allocation6 + $0x70] sm:$0xff]  ;;  %115 = vmatpush.msra.mxu0 %v110_v8  ;;  %v108_v12 = vld [vmem:[#allocation6 + $0x68] sm:$0xff]  ;;  %v148_v13 = vld [vmem:[#allocation8 + $0x40] sm:$0xff] }
  0x19   :  { %162 = vmatpush.msra.mxu1 %v153_v2  ;;  %208 = vmatpush.msra.mxu2 %v201_v7  ;;  %v199_v14 = vld [vmem:[#allocation9 + $0x60] sm:$0xff]  ;;  %v147_v16 = vld [vmem:[#allocation8 + $0x38] sm:$0xff]  ;;  %v146_v19 = vld [vmem:[#allocation8 + $0x30] sm:$0xff] }
  0x1a   :  { %272 = vmatpush.msra.mxu3 %v109_v11  ;;  %116 = vmatpush.msra.mxu0 %v109_v11  ;;  %v107_v15 = vld [vmem:[#allocation6 + $0x60] sm:$0xff]  ;;  %v198_v17 = vld [vmem:[#allocation9 + $0x58] sm:$0xff]  ;;  %v197_v20 = vld [vmem:[#allocation9 + $0x50] sm:$0xff] }
  0x1b   :  { %163 = vmatpush.msra.mxu1 %v152_v3  ;;  %209 = vmatpush.msra.mxu2 %v200_v10  ;;  %v106_v18 = vld [vmem:[#allocation6 + $0x58] sm:$0xff]  ;;  %v105_v21 = vld [vmem:[#allocation6 + $0x50] sm:$0xff]  ;;  %v145_v22 = vld [vmem:[#allocation8 + $0x28] sm:$0xff] }
  0x1c   :  { %273 = vmatpush.msra.mxu3 %v108_v12  ;;  %117 = vmatpush.msra.mxu0 %v108_v12  ;;  %v196_v23 = vld [vmem:[#allocation9 + $0x48] sm:$0xff]  ;;  %v144_v25 = vld [vmem:[#allocation8 + $0x20] sm:$0xff]  ;;  %v143_v28 = vld [vmem:[#allocation8 + $0x18] sm:$0xff] }
  0x1d   :  { %164 = vmatpush.msra.mxu1 %v151_v4  ;;  %210 = vmatpush.msra.mxu2 %v199_v14  ;;  %v104_v24 = vld [vmem:[#allocation6 + $0x48] sm:$0xff]  ;;  %v195_v26 = vld [vmem:[#allocation9 + $0x40] sm:$0xff]  ;;  %v194_v29 = vld [vmem:[#allocation9 + $0x38] sm:$0xff] }
  0x1e   :  { %274 = vmatpush.msra.mxu3 %v107_v15  ;;  %118 = vmatpush.msra.mxu0 %v107_v15  ;;  %v103_v27 = vld [vmem:[#allocation6 + $0x40] sm:$0xff]  ;;  %v102_v30 = vld [vmem:[#allocation6 + $0x38] sm:$0xff]  ;;  %v142_v31 = vld [vmem:[#allocation8 + $0x10] sm:$0xff] }
  0x1f   :  { %165 = vmatpush.msra.mxu1 %v150_v5  ;;  %211 = vmatpush.msra.mxu2 %v198_v17  ;;  %v193_v32 = vld [vmem:[#allocation9 + $0x30] sm:$0xff]  ;;  %v141_v34 = vld [vmem:[#allocation8 + $0x8] sm:$0xff]  ;;  %v140_v37 = vld [vmem:[#allocation8] sm:$0xff] }
  0x20   :  { %275 = vmatpush.msra.mxu3 %v106_v18  ;;  %119 = vmatpush.msra.mxu0 %v106_v18  ;;  %v101_v33 = vld [vmem:[#allocation6 + $0x30] sm:$0xff]  ;;  %v192_v35 = vld [vmem:[#allocation9 + $0x28] sm:$0xff]  ;;  %v191_v38 = vld [vmem:[#allocation9 + $0x20] sm:$0xff] }
  0x21   :  { %166 = vmatpush.msra.mxu1 %v149_v9  ;;  %212 = vmatpush.msra.mxu2 %v197_v20  ;;  %v100_v36 = vld [vmem:[#allocation6 + $0x28] sm:$0xff]  ;;  %v93_v39 = vld [vmem:[#allocation3] sm:$0xff]  ;;  %v190_v40 = vld [vmem:[#allocation9 + $0x18] sm:$0xff] }
  0x22   :  { %276 = vmatpush.msra.mxu3 %v105_v21  ;;  %120 = vmatpush.msra.mxu0 %v105_v21  ;;  %v189_v41 = vld [vmem:[#allocation9 + $0x10] sm:$0xff]  ;;  %v94_v42 = vld [vmem:[#allocation3 + $0x8] sm:$0xff]  ;;  %v188_v43 = vld [vmem:[#allocation9 + $0x8] sm:$0xff] }
  0x23   :  { %167 = vmatpush.msra.mxu1 %v148_v13  ;;  %213 = vmatpush.msra.mxu2 %v196_v23  ;;  %v99_v44 = vld [vmem:[#allocation6 + $0x20] sm:$0xff]  ;;  %v98_v46 = vld [vmem:[#allocation6 + $0x18] sm:$0xff]  ;;  %v97_v47 = vld [vmem:[#allocation6 + $0x10] sm:$0xff] }
  0x24   :  { %277 = vmatpush.msra.mxu3 %v104_v24  ;;  %121 = vmatpush.msra.mxu0 %v104_v24  ;;  %v187_v45 = vld [vmem:[#allocation9] sm:$0xff]  ;;  %v96_v48 = vld [vmem:[#allocation6 + $0x8] sm:$0xff]  ;;  %v295_v50 = vld [vmem:[%s554_s4] ss:$0 sm:$0xff] }
  0x25   :  { %168 = vmatpush.msra.mxu1 %v147_v16  ;;  %214 = vmatpush.msra.mxu2 %v195_v26  ;;  %v95_v49 = vld [vmem:[#allocation6] sm:$0xff]  ;;  %v297_v55 = vld [vmem:[%s552_s2] ss:$0 sm:$0xff] }
  0x26   :  { %278 = vmatpush.msra.mxu3 %v103_v27  ;;  %122 = vmatpush.msra.mxu0 %v103_v27  ;;  %v296_v60 = vld [vmem:[%s556_s6] ss:$0 sm:$0xff] }
  0x27   :  { %169 = vmatpush.msra.mxu1 %v146_v19  ;;  %215 = vmatpush.msra.mxu2 %v194_v29 }
  0x28   :  { %279 = vmatpush.msra.mxu3 %v102_v30  ;;  %123 = vmatpush.msra.mxu0 %v102_v30 }
  0x29   :  { %170 = vmatpush.msra.mxu1 %v145_v22  ;;  %216 = vmatpush.msra.mxu2 %v193_v32 }
  0x2a   :  { %280 = vmatpush.msra.mxu3 %v101_v33  ;;  %124 = vmatpush.msra.mxu0 %v101_v33 }
  0x2b   :  { %171 = vmatpush.msra.mxu1 %v144_v25  ;;  %217 = vmatpush.msra.mxu2 %v192_v35 }
  0x2c   :  { %281 = vmatpush.msra.mxu3 %v100_v36  ;;  %125 = vmatpush.msra.mxu0 %v100_v36 }
  0x2d   :  { %172 = vmatpush.msra.mxu1 %v143_v28  ;;  %218 = vmatpush.msra.mxu2 %v191_v38 }
  0x2e   :  { %282 = vmatpush.msra.mxu3 %v99_v44  ;;  %126 = vmatpush.msra.mxu0 %v99_v44 }
  0x2f   :  { %173 = vmatpush.msra.mxu1 %v142_v31  ;;  %219 = vmatpush.msra.mxu2 %v190_v40 }
  0x30   :  { %283 = vmatpush.msra.mxu3 %v98_v46  ;;  %127 = vmatpush.msra.mxu0 %v98_v46 }
  0x31   :  { %174 = vmatpush.msra.mxu1 %v141_v34  ;;  %220 = vmatpush.msra.mxu2 %v189_v41 }
  0x32   :  { %284 = vmatpush.msra.mxu3 %v97_v47  ;;  %128 = vmatpush.msra.mxu0 %v97_v47 }
  0x33   :  { %175 = vmatpush.msra.mxu1 %v140_v37  ;;  %221 = vmatpush.msra.mxu2 %v188_v43 }
  0x34   :  { %176 = vmatmul.f32.vlgmr.msra.gmra.mxu1 %v93_v39  ;;  %285 = vmatpush.msra.mxu3 %v96_v48 }
  0x35   :  { %222 = vmatpush.msra.mxu2 %v187_v45  ;;  %129 = vmatpush.msra.mxu0 %v96_v48 }
  0x36   :  { %286 = vmatpush.msra.mxu3 %v95_v49 }
  0x37   :  { %134 = vmatmul.f32.vlgmr.msra.gmra.mxu3 %v94_v42  ;;  %130 = vmatpush.msra.mxu0 %v95_v49 }
  0x38   :  { %131 = vmatmul.f32.vlgmr.msra.gmra.mxu0 %v93_v39 }
  0x3c   :  { %179 = vmatmul.f32.gmra.mxu1 %v94_v42 }
  0xb1   :  { %v177_v51 = vpop.f32.mrf.mxu1 }
  0xb2   :  { %v178_v52 = vadd.f32 %v295_v50, %v177_v51 }
  0xb4   :  { %223 = vmatmul.f32.vlgmr.msra.gmra.mxu2 %v178_v52 }
  0xb5   :  { %v132_v56 = vpop.f32.mrf.mxu0 }
  0xb6   :  { %v133_v57 = vadd.f32 %v297_v55, %v132_v56 }
  0xb8   :  { %138 = vst [vmem:[#allocation11] sm:$0xff] %v133_v57 }
  0xb9   :  { %v180_v53 = vpop.f32.mrf.mxu1 }
  0xba   :  { %v181_v54 = vadd.f32 %v295_v50, %v180_v53  ;;  %v135_v58 = vpop.f32.mrf.mxu3 }
  0xbb   :  { %v136_v59 = vadd.f32 %v297_v55, %v135_v58 }
  0xbc   :  { %226 = vmatmul.f32.gmra.mxu2 %v181_v54 }
  0xbd   :  { %139 = vst [vmem:[#allocation11 + $0x8] sm:$0xff] %v136_v59 }
  0xbe   :  { %244 = dma.vmem_to_hbm [thread:$0]  %s237_s28, 256, %s239_s9, [#allocation5], %s453_s13, %s453_s13, %s454_s14  }
 0x137   :  { %v224_v61 = vpop.f32.mrf.mxu2 }
 0x138   :  { %v225_v62 = vadd.f32 %v296_v60, %v224_v61 }
 0x13a   :  { %230 = vst [vmem:[#allocation12] sm:$0xff] %v225_v62 }
 0x13f   :  { %v227_v63 = vpop.f32.mrf.mxu2 }
 0x140   :  { %v228_v0 = vadd.f32 %v296_v60, %v227_v63 }
 0x142   :  { %231 = vst [vmem:[#allocation12 + $0x8] sm:$0xff] %v228_v0 }
 0x143   :  { %257 = dma.vmem_to_hbm [thread:$0]  %s250_s11, 256, %s252_s15, [#allocation13], %s453_s13, %s453_s13, %s454_s14  }
 0x144   :  { %448 = dma.done.wait [#allocation5], 256  }
 0x145   :  { %449 = vsyncadd [#allocation5], 4294967040 }
 0x146   :  { %450 = dma.done.wait [#allocation13], 256  }
 0x147   :  { %451 = vsyncadd [#allocation13], 4294967040 }
 0x148   :  { %266 = vsyncpa [#allocation4], 1 }
 0x149   :  { %267 = vsyncpa [#allocation7], 1 }
 0x14a   :  { %268 = vsyncpa [#allocation10], 1 }
 0x14b   :  { %269 = vsyncpa [#allocation5], 1 }
 0x14c   :  { %270 = vsyncpa [#allocation13], 1 }

</bundles_post_ra>
